<compile_context>
chip_gen: v7x
topology: tpu7x:2x2x1
jax: 0.10.0
libtpu: 0.0.40
codegen_flags: <defaults>
</compile_context>

<pallas_src>
import jax
import jax.numpy as jnp
from jax.experimental import pallas as pl
from jax.experimental.pallas import tpu as pltpu

# ITU-R BT.601 luma coefficients (match the PyTorch module exactly)
_R_W = 0.2989
_G_W = 0.587
_B_W = 0.114


def _to_gray_kernel(img_ref, out_ref):
    # img_ref: (3, TR, C) VMEM tile; out_ref: (TR, C) VMEM tile.
    r = img_ref[0]
    g = img_ref[1]
    b = img_ref[2]
    out_ref[...] = _R_W * r + _G_W * g + _B_W * b


def _pick_view(H, W):
    """Pick a per-channel 2D view (R, C), R*C == H*W, that is lane-dense."""
    N = H * W
    if W % 128 == 0:
        return H, W                      # already lane-aligned
    if N % 128 == 0:
        # Widest multiple-of-128 column count (<= 1024) that divides the plane.
        for cand in (1024, 512, 256, 128):
            if N % cand == 0:
                return N // cand, cand
    # Fallback: native (H, W); trailing lane tile is masked (only hit when
    # neither W nor H*W is a multiple of 128).
    return H, W


def to_grayscale(img, *, vmem_tile_budget_bytes=16 * 1024 * 1024):
    """img: (3, H, W) float32 -> gray: (H, W) float32."""
    c, H, W = img.shape
    assert c == 3, "expected 3-channel (R, G, B) input in CHW layout"

    R, C = _pick_view(H, W)
    # Row-major contiguous data => this reshape is a free re-view of each plane.
    flat = img.reshape(3, R, C)

    # Per grid step the pipeline double-buffers (3 input + 1 output) f32 rows:
    #   2 * 4 * C * 4 bytes per row of the view.
    bytes_per_row = 2 * 4 * C * 4
    max_tile_r = max(8, (vmem_tile_budget_bytes // bytes_per_row) // 8 * 8)

    if max_tile_r >= R:
        # Whole view fits in budget.  Prefer >= 2 row-blocks (v7x megacore),
        # otherwise take the full extent (always a legal block dim).
        half = (R // 2) // 8 * 8
        tile_r = half if half >= 8 else R
    else:
        tile_r = max_tile_r             # multiple of 8 (sublane aligned)

    grid = (pl.cdiv(R, tile_r),)

    gray = pl.pallas_call(
        _to_gray_kernel,
        out_shape=jax.ShapeDtypeStruct((R, C), img.dtype),
        grid_spec=pltpu.PrefetchScalarGridSpec(
            num_scalar_prefetch=0,
            grid=grid,
            in_specs=[
                # All 3 channels of one (tile_r, C) row band; each channel slab
                # is one contiguous HBM region (lane-dense, full view width).
                pl.BlockSpec((3, tile_r, C), lambda i: (0, i, 0)),
            ],
            out_specs=pl.BlockSpec((tile_r, C), lambda i: (i, 0)),
        ),
        compiler_params=pltpu.CompilerParams(
            dimension_semantics=("parallel",),
            vmem_limit_bytes=48 * 1024 * 1024,
        ),
    )(flat)

    return gray.reshape(H, W)


def _reference(img):
    return _R_W * img[0] + _G_W * img[1] + _B_W * img[2]


if __name__ == "__main__":
    key = jax.random.PRNGKey(0)

    # Small, aligned case (W multiple of 128).
    H, W = 16, 128
    img = jax.random.uniform(key, (3, H, W), dtype=jnp.float32)
    gray = jax.block_until_ready(to_grayscale(img))
    assert gray.shape == (H, W)
    assert jnp.allclose(gray, _reference(img), atol=1e-6, rtol=1e-6)

    # Non-lane-aligned width; plane size is a multiple of 128 -> lane-dense view.
    H2, W2 = 12, 160
    img2 = jax.random.uniform(jax.random.PRNGKey(1), (3, H2, W2), dtype=jnp.float32)
    gray2 = jax.block_until_ready(to_grayscale(img2))
    assert gray2.shape == (H2, W2)
    assert jnp.allclose(gray2, _reference(img2), atol=1e-6, rtol=1e-6)

    # Fully awkward shape (neither W nor H*W multiple of 128) -> masked fallback.
    H3, W3 = 10, 30
    img3 = jax.random.uniform(jax.random.PRNGKey(2), (3, H3, W3), dtype=jnp.float32)
    gray3 = jax.block_until_ready(to_grayscale(img3))
    assert gray3.shape == (H3, W3)
    assert jnp.allclose(gray3, _reference(img3), atol=1e-6, rtol=1e-6)

    print("KERNEL_OK")
</pallas_src>

<mosaic_0001>
module attributes {stable_mosaic.version = 11 : i64} {
  func.func @_to_gray_kernel(%arg0: i32, %arg1: memref<3x8x128xf32, #tpu.memory_space<vmem>>, %arg2: memref<8x128xf32, #tpu.memory_space<vmem>>) attributes {dimension_semantics = [#tpu.dimension_semantics<parallel>], iteration_bounds = array<i64: 2>, scalar_prefetch = 0 : i64, scratch_operands = 0 : i64, tpu.core_type = #tpu.core_type<tc>, window_params = [{transform_indices = @transform_0, window_bounds = array<i64: 3, 8, 128>}, {transform_indices = @transform_1, window_bounds = array<i64: 8, 128>}]} {
    %c0 = arith.constant 0 : index
    %c0_0 = arith.constant 0 : index
    %c0_1 = arith.constant 0 : index
    %0 = vector.load %arg1[%c0, %c0_0, %c0_1] : memref<3x8x128xf32, #tpu.memory_space<vmem>>, vector<1x8x128xf32>
    %1 = vector.shape_cast %0 : vector<1x8x128xf32> to vector<8x128xf32>
    %c1 = arith.constant 1 : index
    %c0_2 = arith.constant 0 : index
    %c0_3 = arith.constant 0 : index
    %2 = vector.load %arg1[%c1, %c0_2, %c0_3] : memref<3x8x128xf32, #tpu.memory_space<vmem>>, vector<1x8x128xf32>
    %3 = vector.shape_cast %2 : vector<1x8x128xf32> to vector<8x128xf32>
    %c2 = arith.constant 2 : index
    %c0_4 = arith.constant 0 : index
    %c0_5 = arith.constant 0 : index
    %4 = vector.load %arg1[%c2, %c0_4, %c0_5] : memref<3x8x128xf32, #tpu.memory_space<vmem>>, vector<1x8x128xf32>
    %5 = vector.shape_cast %4 : vector<1x8x128xf32> to vector<8x128xf32>
    %cst = arith.constant 2.989000e-01 : f32
    %6 = vector.broadcast %cst : f32 to vector<8x128xf32>
    %7 = arith.mulf %6, %1 : vector<8x128xf32>
    %cst_6 = arith.constant 5.870000e-01 : f32
    %8 = vector.broadcast %cst_6 : f32 to vector<8x128xf32>
    %9 = arith.mulf %8, %3 : vector<8x128xf32>
    %10 = arith.addf %7, %9 : vector<8x128xf32>
    %cst_7 = arith.constant 1.140000e-01 : f32
    %11 = vector.broadcast %cst_7 : f32 to vector<8x128xf32>
    %12 = arith.mulf %11, %5 : vector<8x128xf32>
    %13 = arith.addf %10, %12 : vector<8x128xf32>
    %c0_8 = arith.constant 0 : index
    %c0_9 = arith.constant 0 : index
    %14 = vector.load %arg2[%c0_8, %c0_9] : memref<8x128xf32, #tpu.memory_space<vmem>>, vector<8x128xf32>
    tpu.vector_store %arg2[%c0_8, %c0_9], %13 {strides = array<i32>} : memref<8x128xf32, #tpu.memory_space<vmem>>, vector<8x128xf32>,
    return
  }
  func.func @transform_0(%arg0: i32) -> (i32, i32, i32) {
    %c0_i32 = arith.constant 0 : i32
    %c0_i32_0 = arith.constant 0 : i32
    %c0_i32_1 = arith.constant 0 : i32
    return %c0_i32, %arg0, %c0_i32_0 : i32, i32, i32
  }
  func.func @transform_1(%arg0: i32) -> (i32, i32) {
    %c0_i32 = arith.constant 0 : i32
    %c0_i32_0 = arith.constant 0 : i32
    return %arg0, %c0_i32 : i32, i32
  }
}

</mosaic_0001>

<bundles_post_ra>
// kernel: tpu_custom_call.1
= control target key start
LH: loop header
LB: loop body
LE: loop exit
PB: predicated region body
PF: predicated region fallthrough
CT: control target
= control target key end

     0   :  { %6 = vsyncpa [#allocation3], 0  ;;  %s562_s0 = inlined_call_operand.hbm [shape: f32[3,16,128], index: 0, kind: input, shape index: {}]   ;;  %s563_s1 = inlined_call_operand.hbm [shape: f32[16,128], index: 1, kind: output, shape index: {}]  }
   0x1   :  { %8 = vsyncpa [#allocation3 + $0x1], 0 }
   0x2   :  { %9 = vsyncpa [#allocation4], 0 }
   0x3   :  { %11 = vsyncpa [#allocation4 + $0x1], 0  ;;  %s405_s6 = smov 0   ;;  %s407_s7 = smov 0  }
   0x4   :  { %s409_s8 = smov 0   ;;  %s411_s9 = smov 0  }
   0x5 LB: > { %s426_s10 = sadd.s32 4294967295, %s388_s9   ;;  %s229_s11 = sadd.s32 4294967294, %s388_s9   ;;  %s388_s9 = sphi %s411_s9, %s576_s9   ;;  %s384_s8 = sphi %s409_s8, %s575_s8   ;;  %s380_s7 = sphi %s407_s7, %s574_s7   ;;  %s376_s6 = sphi %s405_s6, %s573_s6  }
   0x6   : > { %s430_s12 = sadd.s32 1, %s388_s9   ;;  %s24_s13 = sadd.s32 1, %s384_s8 }
   0x7   : > { %s21_s14 = ssub.s32 %s388_s9, %s430_s12  ;;  %p31_p0 = scmp.ne.s32.totalorder %s384_s8, %s380_s7 }
   0x8   : > { %p22_p1 = scmp.eq.s32.totalorder %s21_s14, 0  ;;  %p32_p2 = scmp.eq.s32.totalorder %s388_s9, 0 }
   0x9   : > { %p37_p3 = scmp.ne.s32.totalorder %s380_s7, %s376_s6  ;;  %p38_p4 = scmp.eq.s32.totalorder %s426_s10, 0 }
   0xa   : > { %s442_s15 = scalar_select %p22_p1, %s384_s8, %s24_s13  }
   0xb   : > { %p33_p5 = por %p32_p2, %p31_p0  ;;  %p444_p6 = por %p38_p4, %p37_p3 }
   0xc   : > { %p61_p7 = scmp.eq.s32.totalorder %s426_s10, 1  ;;  %p67_p8 = scmp.eq.s32.totalorder %s229_s11, 1 }
   0xd   : > { %p255_p10 = scmp.lt.s32.totalorder %s388_s9, 2  ;;  %s87_s19 = sand.u32 1, %s384_s8  }
   0xe   : > { %p451_p11 = por %p61_p7, %p31_p0  ;;  %p455_p12 = por %p67_p8, %p37_p3 }
   0xf   : > { %s232_s20 = sshll.u32 %s388_s9, 7  ;;  %s241_s21 = smul.u32 24, %s87_s19 }
  0x10   : > { %s566_s17 = scalar_select %p451_p11, 1, 0 }
  0x11   : > { %s567_s18 = scalar_select %p455_p12, 1, 0 }
  0x12   : > { %s464_s24 = scalar_lea.hbm %s562_s0, %s232_s20  ;;  %p466_p13 = pnand %p255_p10, %p33_p5 }
  0x13   : > { %s91_s26 = scalar_lea.vmem [#allocation2], %s241_s21  ;;  %s473_s28 = scalar_lea.sflag [#allocation3], %s87_s19 }
  0x14   : > { %s97_s27 = sshll.u32 %s91_s26, 4  ;;  %s292_s29 = scalar_lea.hbm %s464_s24, 384  ;;  %s470_s27 = int_to_ptr.vmem [resolvable:$true] %s97_s27 }
  0x15   : > { %p293_p1 = scmp.ne.s32.totalorder %s464_s24, %s292_s29  ;;  %p294_p2 = pneg %p466_p13 }
  0x16   : > { %s297_s3 = scalar_lea.hbm %s562_s0, 768  ;;  %p298_p5 = scmp.lt.u32.totalorder %s464_s24, %s562_s0 }
  0x17   : > { %p295_p3 = pnand %p294_p2, %p293_p1  ;;  %p299_p7 = scmp.lt.u32.totalorder %s297_s3, %s292_s29 }
  0x18   : > { %p301_p10 = scmp.lt.u32.totalorder %s292_s29, %s464_s24 }
  0x19   : > { %p296_p4 = pneg %p295_p3  ;;  %p300_p8 = por %p299_p7, %p298_p5 }
  0x1b   : > { %p302_p9 = por %p301_p10, %p300_p8 }
  0x1d   : > { %p303_p0 = pnand %p302_p9, %p296_p4 }
  0x1f   : > { %306 = shalt.err (!%p303_p0)
}
  0x20   : > { %s307_s11 = scalar_lea.vmem %s470_s27, 384  ;;  %s390_s13 = smov [#allocation2]  }
  0x21   : > { %p308_p1 = scmp.ne.s32.totalorder %s470_s27, %s307_s11  ;;  %s312_s14 = sshll.u32 %s390_s13, 4  ;;  %s313_s14 = int_to_ptr.vmem [resolvable:$false] %s312_s14 }
  0x22   : > { %s314_s19 = scalar_lea.vmem %s313_s14, 768  ;;  %p315_p11 = scmp.lt.s32.totalorder %s470_s27, %s313_s14 }
  0x23   : > { %p310_p3 = pnand %p308_p1, %p294_p2  ;;  %p316_p5 = scmp.lt.s32.totalorder %s314_s19, %s307_s11 }
  0x25   : > { %p311_p12 = pneg %p310_p3  ;;  %p317_p7 = por %p316_p5, %p315_p11 }
  0x27   : > { %p318_p8 = pnand %p317_p7, %p311_p12 }
  0x29   : > { %321 = shalt.err (!%p318_p8)
}
  0x2a   : > { %s391_s20 = smov 256   ;;  %s392_s21 = smov 128  }
  0x2b   : > { %s393_s22 = smov 8   ;;  %p105_p9 = scmp.lt.s32.totalorder %s388_s9, 3 }
  0x2c   : > { %250 = dma.hbm_to_vmem [thread:$0]  (!%p466_p13), %s464_s24, 384, %s470_s27, %s473_s28, %s391_s20, %s392_s21, %s393_s22  }
  0x2d   : > { %p569_p0 = scmp.ge.s32.totalorder %s388_s9, 1 }
  0x2f   : > { %p106_p2 = pnand %p569_p0, %p105_p9 }
  0x30   : > { %s505_s23 = sand.u32 (!%p106_p2), 1, %s380_s7  }
  0x31   : > { %109 = sbr.rel (%p106_p2) target bundleno = 83 (0x53), region = 24  ;;  %s112_s29 = scalar_lea.sflag (!%p106_p2), [#allocation3], %s505_s23 }
  0x32   : > { %s242_s26 = smul.u32 (!%p106_p2), 24, %s505_s23 }
  0x34   : > { %s115_s30 = scalar_lea.vmem (!%p106_p2), [#allocation2], %s242_s26 }
  0x38   : > { %367 = dma.done.wait (%p444_p6), %s112_s29, 384  }
  0x39   : > { %369 = vsyncadd (%p444_p6), %s112_s29, 4294966912  ;;  %s234_s24 = sshll.u32 %s505_s23, 3  ;;  %v134_v0 = vld [vmem:[%s115_s30] sm:$0xff]  ;;  %v235_v1 = vld [vmem:[%s115_s30 + $0x8] sm:$0xff]  ;;  %s238_s28 = sshll.u32 %s426_s10, 7 }
  0x3a   : > { %v236_v2 = vld [vmem:[%s115_s30 + $0x10] sm:$0xff]  ;;  %v139_v3 = vmul.f32 0.2989, %v134_v0  ;;  %v140_v4 = vmul.f32 0.587, %v235_v1  ;;  %s133_s25 = scalar_lea.vmem [#allocation5], %s234_s24  ;;  %s520_s3 = scalar_lea.hbm %s563_s1, %s238_s28 }
  0x3b   : > { %v142_v5 = vmul.f32 0.114, %v236_v2  ;;  %s159_s27 = sshll.u32 %s133_s25, 4  ;;  %s146_s4 = scalar_lea.sflag [#allocation4], %s505_s23  ;;  %s515_s27 = int_to_ptr.vmem [resolvable:$true] %s159_s27 }
  0x3c   : > { %v141_v6 = vadd.f32 %v140_v4, %v139_v3  ;;  %s322_s5 = scalar_lea.vmem %s515_s27, 128  ;;  %p570_p11 = scmp.ne.s32.totalorder %s566_s17, 0 }
  0x3d   : > { %p323_p6 = scmp.ne.s32.totalorder %s515_s27, %s322_s5  ;;  %s394_s10 = smov [#allocation5]  }
  0x3e   : > { %v143_v7 = vadd.f32 %v142_v5, %v141_v6  ;;  %s326_s11 = sshll.u32 %s394_s10, 4  ;;  %s327_s11 = int_to_ptr.vmem [resolvable:$false] %s326_s11 }
  0x3f   : > { %p324_p12 = pnand %p323_p6, %p570_p11  ;;  %s328_s13 = scalar_lea.vmem %s327_s11, 256 }
  0x40   : > { %144 = vst [vmem:[%s133_s25] sm:$0xff] %v143_v7  ;;  %p329_p4 = scmp.lt.s32.totalorder %s515_s27, %s327_s11  ;;  %p330_p10 = scmp.lt.s32.totalorder %s328_s13, %s322_s5 }
  0x41   : > { %p325_p13 = pneg %p324_p12 }
  0x42   : > { %p331_p1 = por %p330_p10, %p329_p4 }
  0x44   : > { %p332_p3 = pnand %p331_p1, %p325_p13 }
  0x46   : > { %335 = shalt.err (!%p332_p3)
}
  0x47   : > { %s336_s14 = scalar_lea.hbm %s520_s3, 128  ;;  %s340_s21 = scalar_lea.hbm %s563_s1, 256 }
  0x48   : > { %p337_p5 = scmp.ne.s32.totalorder %s520_s3, %s336_s14  ;;  %p341_p9 = scmp.lt.u32.totalorder %s520_s3, %s563_s1 }
  0x49   : > { %p342_p0 = scmp.lt.u32.totalorder %s340_s21, %s336_s14  ;;  %p344_p6 = scmp.lt.u32.totalorder %s336_s14, %s520_s3 }
  0x4a   : > { %p338_p7 = pnand %p337_p5, %p570_p11 }
  0x4b   : > { %p343_p2 = por %p342_p0, %p341_p9 }
  0x4c   : > { %p339_p8 = pneg %p338_p7 }
  0x4d   : > { %p345_p12 = por %p344_p6, %p343_p2 }
  0x4f   : > { %p346_p13 = pnand %p345_p12, %p339_p8 }
  0x51   : > { %349 = shalt.err (!%p346_p13)
}
  0x52   : > { %245 = dma.vmem_to_hbm [thread:$0]  (%p570_p11), %s515_s27, 128, %s520_s3, %s146_s4  }
  0x53 PF: > { %s171_s26 = sand.u32 1, %s376_s6   ;;  %p571_p4 = scmp.ne.s32.totalorder %s567_s18, 0 }
  0x54   : > { %p572_p10 = scmp.ge.s32.totalorder %s388_s9, 2  ;;  %s172_s29 = scalar_lea.sflag [#allocation4], %s171_s26 }
  0x56   : > { %p252_p1 = pnand %p572_p10, %p571_p4 }
  0x58   : > { %371 = dma.done.wait (!%p252_p1), %s172_s29, 128  }
  0x59   : > { %373 = vsyncadd (!%p252_p1), %s172_s29, 4294967168  ;;  %p14_p3 = scmp.ge.s32.totalorder %s430_s12, 4   ;;  %s573_s6 = smov %s380_s7 }
  0x5a   : > { %s574_s7 = smov %s384_s8  ;;  %s575_s8 = smov %s442_s15 }
  0x5b   : > { %s576_s9 = smov %s430_s12  ;;  %16 = sbr.rel (!%p14_p3) target bundleno = 5 (0x5), region = 71 }
  0x62   :  { %177 = vsyncpa [#allocation3], 1 }
  0x63   :  { %179 = vsyncpa [#allocation3 + $0x1], 1 }
  0x64   :  { %180 = vsyncpa [#allocation4], 1 }
  0x65   :  { %182 = vsyncpa [#allocation4 + $0x1], 1 }

</bundles_post_ra>
